<compile_context>
chip_gen: v7x
topology: tpu7x:2x2x1
jax: 0.10.0
libtpu: 0.0.40
codegen_flags: <defaults>
</compile_context>

<pallas_src>
import jax
import jax.numpy as jnp
import numpy as np
from jax.experimental import pallas as pl
from jax.experimental.pallas import tpu as pltpu

# ---- model hyper-parameters (small, consistent with the module) -------------
B = 1            # required by the original code (hidden.repeat in the LSTM call)
T = 8            # encoder sequence length (input_encoded.size(1))
E = 32           # encoder_hidden_size
D = 32           # decoder_hidden_size (must equal E for the .view in the bmm)
T_DEC = 4        # input_data.size(1) -> LSTM sequence length
TIME_LEN = 16    # time_length  (fc in_features = E + TIME_LEN)
OUT_FEATS = 1
assert E == D, "original forward only works when encoder_hidden == decoder_hidden"

FC_IN = E + TIME_LEN          # 48
N_FLAT = T * T_DEC            # 32 rows of the flat fc input / y_tilde buffer


def _vspec(shape):
    n = len(shape)
    return pl.BlockSpec(shape, lambda i, _n=n: (0,) * _n)


# ----------------------------- fused kernel ----------------------------------
def _decoder_kernel(enc_ref, fcin_ref, w_ref, cs_ref, out_ref):
    f32 = jnp.float32

    # --- fc(cat(context.repeat, input_data)) as one matmul ------------------
    # fc_in rows are already in torch's flat (B*T * T_dec) order, so y_flat is
    # exactly the buffer that `y_tilde.view(T_dec, B*T, 1)` reinterprets.
    wfc_col = cs_ref[0:FC_IN, 0:1]                     # (48, 1)
    bfc = cs_ref[0:1, 3:4]                             # (1, 1)
    y_flat = (jnp.dot(fcin_ref[...], wfc_col, preferred_element_type=f32)
              + bfc)                                   # (32, 1)

    # --- LSTM weights (loop-invariant loads, all lane-aligned) --------------
    w_i = w_ref[0:D, :]
    w_f = w_ref[D:2 * D, :]
    w_g = w_ref[2 * D:3 * D, :]
    w_o = w_ref[3 * D:4 * D, :]
    wih_i = w_ref[4 * D + 0:4 * D + 1, :]
    wih_f = w_ref[4 * D + 1:4 * D + 2, :]
    wih_g = w_ref[4 * D + 2:4 * D + 3, :]
    wih_o = w_ref[4 * D + 3:4 * D + 4, :]
    b_i = w_ref[4 * D + 4:4 * D + 5, :]
    b_f = w_ref[4 * D + 5:4 * D + 6, :]
    b_g = w_ref[4 * D + 6:4 * D + 7, :]
    b_o = w_ref[4 * D + 7:4 * D + 8, :]

    # --- single-layer LSTM recurrence, h0 = c0 = 0, gate order i,f,g,o ------
    h = jnp.zeros((T, D), f32)
    c = jnp.zeros((T, D), f32)
    for a in range(T_DEC):                             # static unroll (4 steps)
        x = y_flat[a * T:(a + 1) * T, :]               # (8,1): step-a batch rows
        i = jax.nn.sigmoid(x * wih_i + jnp.dot(h, w_i, preferred_element_type=f32) + b_i)
        f = jax.nn.sigmoid(x * wih_f + jnp.dot(h, w_f, preferred_element_type=f32) + b_f)
        g = jnp.tanh(x * wih_g + jnp.dot(h, w_g, preferred_element_type=f32) + b_g)
        o = jax.nn.sigmoid(x * wih_o + jnp.dot(h, w_o, preferred_element_type=f32) + b_o)
        c = f * c + i * g
        h = o * jnp.tanh(c)

    # --- fc_final(cat(hidden[0], context)); context == encoder (exact) ------
    wffh_col = cs_ref[0:D, 1:2]                        # (32, 1)
    wffc_col = cs_ref[0:E, 2:3]                        # (32, 1)
    bff = cs_ref[1:2, 3:4]                             # (1, 1)
    out_ref[...] = (jnp.dot(h, wffh_col, preferred_element_type=f32)
                    + jnp.dot(enc_ref[...], wffc_col, preferred_element_type=f32)
                    + bff)                             # (8, 1)


# ----------------------------- wrapper ----------------------------------------
def decoder_forward(kp, input_encoded, input_data):
    """input_encoded: (B=1, T, E) f32 ; input_data: (B*T, T_dec, TIME_LEN) f32."""
    f32 = jnp.float32
    enc = input_encoded.reshape(T, E)

    # softmax over the size-1 dim is exactly 1.0 -> bmm(attn, enc) == enc,
    # so context is the encoder output itself (exact; B == 1 path only).
    context = enc.reshape(T, 1, E)

    # torch: cat((context.repeat(1, T_dec, 1), input_data), dim=2).view(-1, E+TL)
    # reproduced host-side as pure layout plumbing -> one lane-dense kernel input.
    fc_in = jnp.concatenate(
        [jnp.repeat(enc, T_DEC, axis=0),
         input_data.reshape(N_FLAT, TIME_LEN)], axis=1).astype(f32)   # (32, 48)

    out = pl.pallas_call(
        _decoder_kernel,
        grid=(1,),
        in_specs=[_vspec((T, E)),
                  _vspec((N_FLAT, FC_IN)),
                  _vspec((4 * D + 8, D)),
                  _vspec((FC_IN, 4))],
        out_specs=_vspec((T, OUT_FEATS)),
        out_shape=jax.ShapeDtypeStruct((T, OUT_FEATS), f32),
        compiler_params=pltpu.CompilerParams(dimension_semantics=("arbitrary",)),
    )(enc, fc_in, kp['wslab'], kp['cslab'])

    return out, context


# --------------------- deterministic parameter init ---------------------------
def make_params(key):
    ks = jax.random.split(key, 12)
    f32 = jnp.float32
    # attention params only feed the reference (they cannot affect the output:
    # the softmax over a singleton dim erases them exactly).
    w1 = jax.random.normal(ks[0], (E, 2 * D + E), f32) * 0.1
    b1 = jax.random.normal(ks[1], (E,), f32) * 0.1
    w2 = jax.random.normal(ks[2], (1, E), f32) * 0.1
    b2 = jax.random.normal(ks[3], (1,), f32) * 0.1
    fc_w = jax.random.normal(ks[4], (1, E + TIME_LEN), f32)            # fc.weight.data.normal_()
    fc_b = jax.random.normal(ks[5], (1,), f32) * 0.1
    s = 1.0 / np.sqrt(D)
    wih = jax.random.uniform(ks[6], (4 * D, 1), f32, -s, s)
    whh = jax.random.uniform(ks[7], (4 * D, D), f32, -s, s)
    bih = jax.random.uniform(ks[8], (4 * D,), f32, -s, s)
    bhh = jax.random.uniform(ks[9], (4 * D,), f32, -s, s)
    ff_w = jax.random.normal(ks[10], (1, D + E), f32) * 0.1            # fc_final
    ff_b = jax.random.normal(ks[11], (1,), f32) * 0.1

    torch_p = dict(w1=w1, b1=b1, w2=w2, b2=b2, fc_w=fc_w, fc_b=fc_b,
                   wih=wih, whh=whh, bih=bih, bhh=bhh, ff_w=ff_w, ff_b=ff_b)

    # --- weight slab 1: LSTM recurrence, rows 0:128 = Whh_{i,f,g,o}^T,
    #     rows 128:132 = W_ih gate rows, rows 132:136 = (bih+bhh) gate rows ---
    bias = bih + bhh
    rows = [whh[g * D:(g + 1) * D, :].T for g in range(4)]             # 4 x (D, D)
    rows += [wih[g * D:(g + 1) * D, 0].reshape(1, D) for g in range(4)]
    rows += [bias[g * D:(g + 1) * D].reshape(1, D) for g in range(4)]
    wslab = jnp.concatenate(rows, axis=0)                              # (136, 32)

    # --- weight slab 2: column vectors for fc / fc_final + both biases ------
    zpad = jnp.zeros((TIME_LEN, 1), f32)
    col_fc = fc_w.reshape(FC_IN, 1)                                    # [ctx | data] order
    col_ffh = jnp.concatenate([ff_w[0, :D].reshape(D, 1), zpad], axis=0)
    col_ffc = jnp.concatenate([ff_w[0, D:].reshape(E, 1), zpad], axis=0)
    col_b = jnp.zeros((FC_IN, 1), f32).at[0, 0].set(fc_b[0]).at[1, 0].set(ff_b[0])
    cslab = jnp.concatenate([col_fc, col_ffh, col_ffc, col_b], axis=1)  # (48, 4)

    kernel_p = dict(wslab=wslab, cslab=cslab)
    return torch_p, kernel_p


# ----------------- literal plain-JAX port of the PyTorch forward --------------
def reference_forward(p, input_encoded, input_data):
    Bn, Tn, _ = input_encoded.shape
    hidden = jnp.zeros((1, Bn, D), jnp.float32)
    cell = jnp.zeros((1, Bn, D), jnp.float32)
    x = jnp.concatenate([
        jnp.transpose(jnp.tile(hidden, (Tn, 1, 1)), (1, 0, 2)),
        jnp.transpose(jnp.tile(cell, (Tn, 1, 1)), (1, 0, 2)),
        input_encoded], axis=2)
    a1 = jnp.tanh(x.reshape(-1, 2 * D + E) @ p['w1'].T + p['b1'])
    scores = (a1 @ p['w2'].T + p['b2']).reshape(-1, 1)
    attn = jax.nn.softmax(scores, axis=1)                              # ones
    ctx = attn[:, None, :] @ input_encoded.reshape(-1, 1, D)           # (B*T, 1, E)
    Nd = input_data.shape[1]
    cat = jnp.concatenate([jnp.tile(ctx, (1, Nd, 1)), input_data], axis=2)
    y = cat @ p['fc_w'].T + p['fc_b']                                  # (B*T, Nd, 1)
    y_view = y.reshape(Nd, Bn * Tn, 1)
    h = jnp.zeros((Bn * Tn, D), jnp.float32)
    c = jnp.zeros((Bn * Tn, D), jnp.float32)
    for a in range(Nd):
        xt = y_view[a]
        gates = xt @ p['wih'].T + p['bih'] + h @ p['whh'].T + p['bhh']
        i = jax.nn.sigmoid(gates[:, :D]); f = jax.nn.sigmoid(gates[:, D:2 * D])
        g = jnp.tanh(gates[:, 2 * D:3 * D]); o = jax.nn.sigmoid(gates[:, 3 * D:])
        c = f * c + i * g
        h = o * jnp.tanh(c)
    ctx_v = ctx.reshape(1, ctx.shape[0], -1)
    final_in = jnp.concatenate([h[None, :, :], ctx_v], axis=2).reshape(-1, D + E)
    out = final_in @ p['ff_w'].T + p['ff_b']
    return out, ctx


if __name__ == "__main__":
    key = jax.random.PRNGKey(0)
    kparam, kenc, kdat = jax.random.split(key, 3)
    torch_p, kernel_p = make_params(kparam)

    input_encoded = jax.random.normal(kenc, (B, T, E), jnp.float32)
    input_data = jax.random.normal(kdat, (B * T, T_DEC, TIME_LEN), jnp.float32)

    out, ctx = decoder_forward(kernel_p, input_encoded, input_data)
    jax.block_until_ready((out, ctx))

    ref_out, ref_ctx = reference_forward(torch_p, input_encoded, input_data)
    assert out.shape == (B * T, OUT_FEATS) and ctx.shape == (B * T, 1, E)
    np.testing.assert_allclose(np.asarray(out), np.asarray(ref_out), rtol=1e-3, atol=1e-3)
    np.testing.assert_allclose(np.asarray(ctx), np.asarray(ref_ctx), rtol=1e-3, atol=1e-3)
    print("KERNEL_OK")
</pallas_src>

<mosaic_0001>
module attributes {stable_mosaic.version = 11 : i64} {
  func.func @_decoder_kernel(%arg0: i32, %arg1: memref<8x32xf32, #tpu.memory_space<vmem>>, %arg2: memref<32x48xf32, #tpu.memory_space<vmem>>, %arg3: memref<136x32xf32, #tpu.memory_space<vmem>>, %arg4: memref<48x4xf32, #tpu.memory_space<vmem>>, %arg5: memref<8x1xf32, #tpu.memory_space<vmem>>) attributes {dimension_semantics = [#tpu.dimension_semantics<arbitrary>], iteration_bounds = array<i64: 1>, scalar_prefetch = 0 : i64, scratch_operands = 0 : i64, tpu.core_type = #tpu.core_type<tc>, window_params = [{pipeline_mode = #tpu.pipeline_mode<synchronous>, transform_indices = @transform_0, window_bounds = array<i64: 8, 32>}, {pipeline_mode = #tpu.pipeline_mode<synchronous>, transform_indices = @transform_1, window_bounds = array<i64: 32, 48>}, {pipeline_mode = #tpu.pipeline_mode<synchronous>, transform_indices = @transform_2, window_bounds = array<i64: 136, 32>}, {pipeline_mode = #tpu.pipeline_mode<synchronous>, transform_indices = @transform_3, window_bounds = array<i64: 48, 4>}, {pipeline_mode = #tpu.pipeline_mode<synchronous>, transform_indices = @transform_4, window_bounds = array<i64: 8, 1>}]} {
    %c0 = arith.constant 0 : index
    %c0_0 = arith.constant 0 : index
    %0 = vector.load %arg4[%c0, %c0_0] : memref<48x4xf32, #tpu.memory_space<vmem>>, vector<48x1xf32>
    %c0_1 = arith.constant 0 : index
    %c3 = arith.constant 3 : index
    %1 = vector.load %arg4[%c0_1, %c3] : memref<48x4xf32, #tpu.memory_space<vmem>>, vector<1x1xf32>
    %c0_2 = arith.constant 0 : index
    %c0_3 = arith.constant 0 : index
    %2 = vector.load %arg2[%c0_2, %c0_3] : memref<32x48xf32, #tpu.memory_space<vmem>>, vector<32x48xf32>
    %cst = arith.constant dense<0.000000e+00> : vector<32x1xf32>
    %3 = tpu.matmul %2, %0, %cst {dimension_numbers = #tpu.dot_dimension_numbers<[1], [0], [0], [1], [0, 0, 1, 1], [], []>} : vector<32x48xf32>, vector<48x1xf32>, vector<32x1xf32> -> vector<32x1xf32>
    %4 = vector.broadcast %1 : vector<1x1xf32> to vector<32x1xf32>
    %5 = arith.addf %3, %4 : vector<32x1xf32>
    %c0_4 = arith.constant 0 : index
    %c0_5 = arith.constant 0 : index
    %6 = vector.load %arg3[%c0_4, %c0_5] : memref<136x32xf32, #tpu.memory_space<vmem>>, vector<32x32xf32>
    %c32 = arith.constant 32 : index
    %c0_6 = arith.constant 0 : index
    %7 = vector.load %arg3[%c32, %c0_6] : memref<136x32xf32, #tpu.memory_space<vmem>>, vector<32x32xf32>
    %c64 = arith.constant 64 : index
    %c0_7 = arith.constant 0 : index
    %8 = vector.load %arg3[%c64, %c0_7] : memref<136x32xf32, #tpu.memory_space<vmem>>, vector<32x32xf32>
    %c96 = arith.constant 96 : index
    %c0_8 = arith.constant 0 : index
    %9 = vector.load %arg3[%c96, %c0_8] : memref<136x32xf32, #tpu.memory_space<vmem>>, vector<32x32xf32>
    %c128 = arith.constant 128 : index
    %c0_9 = arith.constant 0 : index
    %10 = vector.load %arg3[%c128, %c0_9] : memref<136x32xf32, #tpu.memory_space<vmem>>, vector<1x32xf32>
    %c129 = arith.constant 129 : index
    %c0_10 = arith.constant 0 : index
    %11 = vector.load %arg3[%c129, %c0_10] : memref<136x32xf32, #tpu.memory_space<vmem>>, vector<1x32xf32>
    %c130 = arith.constant 130 : index
    %c0_11 = arith.constant 0 : index
    %12 = vector.load %arg3[%c130, %c0_11] : memref<136x32xf32, #tpu.memory_space<vmem>>, vector<1x32xf32>
    %c131 = arith.constant 131 : index
    %c0_12 = arith.constant 0 : index
    %13 = vector.load %arg3[%c131, %c0_12] : memref<136x32xf32, #tpu.memory_space<vmem>>, vector<1x32xf32>
    %c132 = arith.constant 132 : index
    %c0_13 = arith.constant 0 : index
    %14 = vector.load %arg3[%c132, %c0_13] : memref<136x32xf32, #tpu.memory_space<vmem>>, vector<1x32xf32>
    %c133 = arith.constant 133 : index
    %c0_14 = arith.constant 0 : index
    %15 = vector.load %arg3[%c133, %c0_14] : memref<136x32xf32, #tpu.memory_space<vmem>>, vector<1x32xf32>
    %c134 = arith.constant 134 : index
    %c0_15 = arith.constant 0 : index
    %16 = vector.load %arg3[%c134, %c0_15] : memref<136x32xf32, #tpu.memory_space<vmem>>, vector<1x32xf32>
    %c135 = arith.constant 135 : index
    %c0_16 = arith.constant 0 : index
    %17 = vector.load %arg3[%c135, %c0_16] : memref<136x32xf32, #tpu.memory_space<vmem>>, vector<1x32xf32>
    %cst_17 = arith.constant 0.000000e+00 : f32
    %18 = vector.broadcast %cst_17 : f32 to vector<8x32xf32>
    %cst_18 = arith.constant 0.000000e+00 : f32
    %19 = vector.broadcast %cst_18 : f32 to vector<8x32xf32>
    %20 = vector.extract_strided_slice %5 {offsets = [0, 0], sizes = [8, 1], strides = [1, 1]} : vector<32x1xf32> to vector<8x1xf32>
    %21 = vector.broadcast %20 : vector<8x1xf32> to vector<8x32xf32>
    %22 = vector.broadcast %10 : vector<1x32xf32> to vector<8x32xf32>
    %23 = arith.mulf %21, %22 : vector<8x32xf32>
    %cst_19 = arith.constant dense<0.000000e+00> : vector<8x32xf32>
    %24 = tpu.matmul %18, %6, %cst_19 {dimension_numbers = #tpu.dot_dimension_numbers<[1], [0], [0], [1], [0, 0, 1, 1], [], []>} : vector<8x32xf32>, vector<32x32xf32>, vector<8x32xf32> -> vector<8x32xf32>
    %25 = arith.addf %23, %24 : vector<8x32xf32>
    %26 = vector.broadcast %14 : vector<1x32xf32> to vector<8x32xf32>
    %27 = arith.addf %25, %26 : vector<8x32xf32>
    %28 = arith.negf %27 : vector<8x32xf32>
    %29 = math.exp %28 : vector<8x32xf32>
    %cst_20 = arith.constant 1.000000e+00 : f32
    %30 = vector.broadcast %cst_20 : f32 to vector<8x32xf32>
    %31 = arith.addf %30, %29 : vector<8x32xf32>
    %32 = arith.divf %30, %31 : vector<8x32xf32>
    %33 = vector.broadcast %20 : vector<8x1xf32> to vector<8x32xf32>
    %34 = vector.broadcast %11 : vector<1x32xf32> to vector<8x32xf32>
    %35 = arith.mulf %33, %34 : vector<8x32xf32>
    %cst_21 = arith.constant dense<0.000000e+00> : vector<8x32xf32>
    %36 = tpu.matmul %18, %7, %cst_21 {dimension_numbers = #tpu.dot_dimension_numbers<[1], [0], [0], [1], [0, 0, 1, 1], [], []>} : vector<8x32xf32>, vector<32x32xf32>, vector<8x32xf32> -> vector<8x32xf32>
    %37 = arith.addf %35, %36 : vector<8x32xf32>
    %38 = vector.broadcast %15 : vector<1x32xf32> to vector<8x32xf32>
    %39 = arith.addf %37, %38 : vector<8x32xf32>
    %40 = arith.negf %39 : vector<8x32xf32>
    %41 = math.exp %40 : vector<8x32xf32>
    %cst_22 = arith.constant 1.000000e+00 : f32
    %42 = vector.broadcast %cst_22 : f32 to vector<8x32xf32>
    %43 = arith.addf %42, %41 : vector<8x32xf32>
    %44 = arith.divf %42, %43 : vector<8x32xf32>
    %45 = vector.broadcast %20 : vector<8x1xf32> to vector<8x32xf32>
    %46 = vector.broadcast %12 : vector<1x32xf32> to vector<8x32xf32>
    %47 = arith.mulf %45, %46 : vector<8x32xf32>
    %cst_23 = arith.constant dense<0.000000e+00> : vector<8x32xf32>
    %48 = tpu.matmul %18, %8, %cst_23 {dimension_numbers = #tpu.dot_dimension_numbers<[1], [0], [0], [1], [0, 0, 1, 1], [], []>} : vector<8x32xf32>, vector<32x32xf32>, vector<8x32xf32> -> vector<8x32xf32>
    %49 = arith.addf %47, %48 : vector<8x32xf32>
    %50 = vector.broadcast %16 : vector<1x32xf32> to vector<8x32xf32>
    %51 = arith.addf %49, %50 : vector<8x32xf32>
    %52 = math.tanh %51 : vector<8x32xf32>
    %53 = vector.broadcast %20 : vector<8x1xf32> to vector<8x32xf32>
    %54 = vector.broadcast %13 : vector<1x32xf32> to vector<8x32xf32>
    %55 = arith.mulf %53, %54 : vector<8x32xf32>
    %cst_24 = arith.constant dense<0.000000e+00> : vector<8x32xf32>
    %56 = tpu.matmul %18, %9, %cst_24 {dimension_numbers = #tpu.dot_dimension_numbers<[1], [0], [0], [1], [0, 0, 1, 1], [], []>} : vector<8x32xf32>, vector<32x32xf32>, vector<8x32xf32> -> vector<8x32xf32>
    %57 = arith.addf %55, %56 : vector<8x32xf32>
    %58 = vector.broadcast %17 : vector<1x32xf32> to vector<8x32xf32>
    %59 = arith.addf %57, %58 : vector<8x32xf32>
    %60 = arith.negf %59 : vector<8x32xf32>
    %61 = math.exp %60 : vector<8x32xf32>
    %cst_25 = arith.constant 1.000000e+00 : f32
    %62 = vector.broadcast %cst_25 : f32 to vector<8x32xf32>
    %63 = arith.addf %62, %61 : vector<8x32xf32>
    %64 = arith.divf %62, %63 : vector<8x32xf32>
    %65 = arith.mulf %44, %19 : vector<8x32xf32>
    %66 = arith.mulf %32, %52 : vector<8x32xf32>
    %67 = arith.addf %65, %66 : vector<8x32xf32>
    %68 = math.tanh %67 : vector<8x32xf32>
    %69 = arith.mulf %64, %68 : vector<8x32xf32>
    %70 = vector.extract_strided_slice %5 {offsets = [8, 0], sizes = [8, 1], strides = [1, 1]} : vector<32x1xf32> to vector<8x1xf32>
    %71 = vector.broadcast %70 : vector<8x1xf32> to vector<8x32xf32>
    %72 = vector.broadcast %10 : vector<1x32xf32> to vector<8x32xf32>
    %73 = arith.mulf %71, %72 : vector<8x32xf32>
    %cst_26 = arith.constant dense<0.000000e+00> : vector<8x32xf32>
    %74 = tpu.matmul %69, %6, %cst_26 {dimension_numbers = #tpu.dot_dimension_numbers<[1], [0], [0], [1], [0, 0, 1, 1], [], []>} : vector<8x32xf32>, vector<32x32xf32>, vector<8x32xf32> -> vector<8x32xf32>
    %75 = arith.addf %73, %74 : vector<8x32xf32>
    %76 = vector.broadcast %14 : vector<1x32xf32> to vector<8x32xf32>
    %77 = arith.addf %75, %76 : vector<8x32xf32>
    %78 = arith.negf %77 : vector<8x32xf32>
    %79 = math.exp %78 : vector<8x32xf32>
    %cst_27 = arith.constant 1.000000e+00 : f32
    %80 = vector.broadcast %cst_27 : f32 to vector<8x32xf32>
    %81 = arith.addf %80, %79 : vector<8x32xf32>
    %82 = arith.divf %80, %81 : vector<8x32xf32>
    %83 = vector.broadcast %70 : vector<8x1xf32> to vector<8x32xf32>
    %84 = vector.broadcast %11 : vector<1x32xf32> to vector<8x32xf32>
    %85 = arith.mulf %83, %84 : vector<8x32xf32>
    %cst_28 = arith.constant dense<0.000000e+00> : vector<8x32xf32>
    %86 = tpu.matmul %69, %7, %cst_28 {dimension_numbers = #tpu.dot_dimension_numbers<[1], [0], [0], [1], [0, 0, 1, 1], [], []>} : vector<8x32xf32>, vector<32x32xf32>, vector<8x32xf32> -> vector<8x32xf32>
    %87 = arith.addf %85, %86 : vector<8x32xf32>
    %88 = vector.broadcast %15 : vector<1x32xf32> to vector<8x32xf32>
    %89 = arith.addf %87, %88 : vector<8x32xf32>
    %90 = arith.negf %89 : vector<8x32xf32>
    %91 = math.exp %90 : vector<8x32xf32>
    %cst_29 = arith.constant 1.000000e+00 : f32
    %92 = vector.broadcast %cst_29 : f32 to vector<8x32xf32>
    %93 = arith.addf %92, %91 : vector<8x32xf32>
    %94 = arith.divf %92, %93 : vector<8x32xf32>
    %95 = vector.broadcast %70 : vector<8x1xf32> to vector<8x32xf32>
    %96 = vector.broadcast %12 : vector<1x32xf32> to vector<8x32xf32>
    %97 = arith.mulf %95, %96 : vector<8x32xf32>
    %cst_30 = arith.constant dense<0.000000e+00> : vector<8x32xf32>
    %98 = tpu.matmul %69, %8, %cst_30 {dimension_numbers = #tpu.dot_dimension_numbers<[1], [0], [0], [1], [0, 0, 1, 1], [], []>} : vector<8x32xf32>, vector<32x32xf32>, vector<8x32xf32> -> vector<8x32xf32>
    %99 = arith.addf %97, %98 : vector<8x32xf32>
    %100 = vector.broadcast %16 : vector<1x32xf32> to vector<8x32xf32>
    %101 = arith.addf %99, %100 : vector<8x32xf32>
    %102 = math.tanh %101 : vector<8x32xf32>
    %103 = vector.broadcast %70 : vector<8x1xf32> to vector<8x32xf32>
    %104 = vector.broadcast %13 : vector<1x32xf32> to vector<8x32xf32>
    %105 = arith.mulf %103, %104 : vector<8x32xf32>
    %cst_31 = arith.constant dense<0.000000e+00> : vector<8x32xf32>
    %106 = tpu.matmul %69, %9, %cst_31 {dimension_numbers = #tpu.dot_dimension_numbers<[1], [0], [0], [1], [0, 0, 1, 1], [], []>} : vector<8x32xf32>, vector<32x32xf32>, vector<8x32xf32> -> vector<8x32xf32>
    %107 = arith.addf %105, %106 : vector<8x32xf32>
    %108 = vector.broadcast %17 : vector<1x32xf32> to vector<8x32xf32>
    %109 = arith.addf %107, %108 : vector<8x32xf32>
    %110 = arith.negf %109 : vector<8x32xf32>
    %111 = math.exp %110 : vector<8x32xf32>
    %cst_32 = arith.constant 1.000000e+00 : f32
    %112 = vector.broadcast %cst_32 : f32 to vector<8x32xf32>
    %113 = arith.addf %112, %111 : vector<8x32xf32>
    %114 = arith.divf %112, %113 : vector<8x32xf32>
    %115 = arith.mulf %94, %67 : vector<8x32xf32>
    %116 = arith.mulf %82, %102 : vector<8x32xf32>
    %117 = arith.addf %115, %116 : vector<8x32xf32>
    %118 = math.tanh %117 : vector<8x32xf32>
    %119 = arith.mulf %114, %118 : vector<8x32xf32>
    %120 = vector.extract_strided_slice %5 {offsets = [16, 0], sizes = [8, 1], strides = [1, 1]} : vector<32x1xf32> to vector<8x1xf32>
    %121 = vector.broadcast %120 : vector<8x1xf32> to vector<8x32xf32>
    %122 = vector.broadcast %10 : vector<1x32xf32> to vector<8x32xf32>
    %123 = arith.mulf %121, %122 : vector<8x32xf32>
    %cst_33 = arith.constant dense<0.000000e+00> : vector<8x32xf32>
    %124 = tpu.matmul %119, %6, %cst_33 {dimension_numbers = #tpu.dot_dimension_numbers<[1], [0], [0], [1], [0, 0, 1, 1], [], []>} : vector<8x32xf32>, vector<32x32xf32>, vector<8x32xf32> -> vector<8x32xf32>
    %125 = arith.addf %123, %124 : vector<8x32xf32>
    %126 = vector.broadcast %14 : vector<1x32xf32> to vector<8x32xf32>
    %127 = arith.addf %125, %126 : vector<8x32xf32>
    %128 = arith.negf %127 : vector<8x32xf32>
    %129 = math.exp %128 : vector<8x32xf32>
    %cst_34 = arith.constant 1.000000e+00 : f32
    %130 = vector.broadcast %cst_34 : f32 to vector<8x32xf32>
    %131 = arith.addf %130, %129 : vector<8x32xf32>
    %132 = arith.divf %130, %131 : vector<8x32xf32>
    %133 = vector.broadcast %120 : vector<8x1xf32> to vector<8x32xf32>
    %134 = vector.broadcast %11 : vector<1x32xf32> to vector<8x32xf32>
    %135 = arith.mulf %133, %134 : vector<8x32xf32>
    %cst_35 = arith.constant dense<0.000000e+00> : vector<8x32xf32>
    %136 = tpu.matmul %119, %7, %cst_35 {dimension_numbers = #tpu.dot_dimension_numbers<[1], [0], [0], [1], [0, 0, 1, 1], [], []>} : vector<8x32xf32>, vector<32x32xf32>, vector<8x32xf32> -> vector<8x32xf32>
    %137 = arith.addf %135, %136 : vector<8x32xf32>
    %138 = vector.broadcast %15 : vector<1x32xf32> to vector<8x32xf32>
    %139 = arith.addf %137, %138 : vector<8x32xf32>
    %140 = arith.negf %139 : vector<8x32xf32>
    %141 = math.exp %140 : vector<8x32xf32>
    %cst_36 = arith.constant 1.000000e+00 : f32
    %142 = vector.broadcast %cst_36 : f32 to vector<8x32xf32>
    %143 = arith.addf %142, %141 : vector<8x32xf32>
    %144 = arith.divf %142, %143 : vector<8x32xf32>
    %145 = vector.broadcast %120 : vector<8x1xf32> to vector<8x32xf32>
    %146 = vector.broadcast %12 : vector<1x32xf32> to vector<8x32xf32>
    %147 = arith.mulf %145, %146 : vector<8x32xf32>
    %cst_37 = arith.constant dense<0.000000e+00> : vector<8x32xf32>
    %148 = tpu.matmul %119, %8, %cst_37 {dimension_numbers = #tpu.dot_dimension_numbers<[1], [0], [0], [1], [0, 0, 1, 1], [], []>} : vector<8x32xf32>, vector<32x32xf32>, vector<8x32xf32> -> vector<8x32xf32>
    %149 = arith.addf %147, %148 : vector<8x32xf32>
    %150 = vector.broadcast %16 : vector<1x32xf32> to vector<8x32xf32>
    %151 = arith.addf %149, %150 : vector<8x32xf32>
    %152 = math.tanh %151 : vector<8x32xf32>
    %153 = vector.broadcast %120 : vector<8x1xf32> to vector<8x32xf32>
    %154 = vector.broadcast %13 : vector<1x32xf32> to vector<8x32xf32>
    %155 = arith.mulf %153, %154 : vector<8x32xf32>
    %cst_38 = arith.constant dense<0.000000e+00> : vector<8x32xf32>
    %156 = tpu.matmul %119, %9, %cst_38 {dimension_numbers = #tpu.dot_dimension_numbers<[1], [0], [0], [1], [0, 0, 1, 1], [], []>} : vector<8x32xf32>, vector<32x32xf32>, vector<8x32xf32> -> vector<8x32xf32>
    %157 = arith.addf %155, %156 : vector<8x32xf32>
    %158 = vector.broadcast %17 : vector<1x32xf32> to vector<8x32xf32>
    %159 = arith.addf %157, %158 : vector<8x32xf32>
    %160 = arith.negf %159 : vector<8x32xf32>
    %161 = math.exp %160 : vector<8x32xf32>
    %cst_39 = arith.constant 1.000000e+00 : f32
    %162 = vector.broadcast %cst_39 : f32 to vector<8x32xf32>
    %163 = arith.addf %162, %161 : vector<8x32xf32>
    %164 = arith.divf %162, %163 : vector<8x32xf32>
    %165 = arith.mulf %144, %117 : vector<8x32xf32>
    %166 = arith.mulf %132, %152 : vector<8x32xf32>
    %167 = arith.addf %165, %166 : vector<8x32xf32>
    %168 = math.tanh %167 : vector<8x32xf32>
    %169 = arith.mulf %164, %168 : vector<8x32xf32>
    %170 = vector.extract_strided_slice %5 {offsets = [24, 0], sizes = [8, 1], strides = [1, 1]} : vector<32x1xf32> to vector<8x1xf32>
    %171 = vector.broadcast %170 : vector<8x1xf32> to vector<8x32xf32>
    %172 = vector.broadcast %10 : vector<1x32xf32> to vector<8x32xf32>
    %173 = arith.mulf %171, %172 : vector<8x32xf32>
    %cst_40 = arith.constant dense<0.000000e+00> : vector<8x32xf32>
    %174 = tpu.matmul %169, %6, %cst_40 {dimension_numbers = #tpu.dot_dimension_numbers<[1], [0], [0], [1], [0, 0, 1, 1], [], []>} : vector<8x32xf32>, vector<32x32xf32>, vector<8x32xf32> -> vector<8x32xf32>
    %175 = arith.addf %173, %174 : vector<8x32xf32>
    %176 = vector.broadcast %14 : vector<1x32xf32> to vector<8x32xf32>
    %177 = arith.addf %175, %176 : vector<8x32xf32>
    %178 = arith.negf %177 : vector<8x32xf32>
    %179 = math.exp %178 : vector<8x32xf32>
    %cst_41 = arith.constant 1.000000e+00 : f32
    %180 = vector.broadcast %cst_41 : f32 to vector<8x32xf32>
    %181 = arith.addf %180, %179 : vector<8x32xf32>
    %182 = arith.divf %180, %181 : vector<8x32xf32>
    %183 = vector.broadcast %170 : vector<8x1xf32> to vector<8x32xf32>
    %184 = vector.broadcast %11 : vector<1x32xf32> to vector<8x32xf32>
    %185 = arith.mulf %183, %184 : vector<8x32xf32>
    %cst_42 = arith.constant dense<0.000000e+00> : vector<8x32xf32>
    %186 = tpu.matmul %169, %7, %cst_42 {dimension_numbers = #tpu.dot_dimension_numbers<[1], [0], [0], [1], [0, 0, 1, 1], [], []>} : vector<8x32xf32>, vector<32x32xf32>, vector<8x32xf32> -> vector<8x32xf32>
    %187 = arith.addf %185, %186 : vector<8x32xf32>
    %188 = vector.broadcast %15 : vector<1x32xf32> to vector<8x32xf32>
    %189 = arith.addf %187, %188 : vector<8x32xf32>
    %190 = arith.negf %189 : vector<8x32xf32>
    %191 = math.exp %190 : vector<8x32xf32>
    %cst_43 = arith.constant 1.000000e+00 : f32
    %192 = vector.broadcast %cst_43 : f32 to vector<8x32xf32>
    %193 = arith.addf %192, %191 : vector<8x32xf32>
    %194 = arith.divf %192, %193 : vector<8x32xf32>
    %195 = vector.broadcast %170 : vector<8x1xf32> to vector<8x32xf32>
    %196 = vector.broadcast %12 : vector<1x32xf32> to vector<8x32xf32>
    %197 = arith.mulf %195, %196 : vector<8x32xf32>
    %cst_44 = arith.constant dense<0.000000e+00> : vector<8x32xf32>
    %198 = tpu.matmul %169, %8, %cst_44 {dimension_numbers = #tpu.dot_dimension_numbers<[1], [0], [0], [1], [0, 0, 1, 1], [], []>} : vector<8x32xf32>, vector<32x32xf32>, vector<8x32xf32> -> vector<8x32xf32>
    %199 = arith.addf %197, %198 : vector<8x32xf32>
    %200 = vector.broadcast %16 : vector<1x32xf32> to vector<8x32xf32>
    %201 = arith.addf %199, %200 : vector<8x32xf32>
    %202 = math.tanh %201 : vector<8x32xf32>
    %203 = vector.broadcast %170 : vector<8x1xf32> to vector<8x32xf32>
    %204 = vector.broadcast %13 : vector<1x32xf32> to vector<8x32xf32>
    %205 = arith.mulf %203, %204 : vector<8x32xf32>
    %cst_45 = arith.constant dense<0.000000e+00> : vector<8x32xf32>
    %206 = tpu.matmul %169, %9, %cst_45 {dimension_numbers = #tpu.dot_dimension_numbers<[1], [0], [0], [1], [0, 0, 1, 1], [], []>} : vector<8x32xf32>, vector<32x32xf32>, vector<8x32xf32> -> vector<8x32xf32>
    %207 = arith.addf %205, %206 : vector<8x32xf32>
    %208 = vector.broadcast %17 : vector<1x32xf32> to vector<8x32xf32>
    %209 = arith.addf %207, %208 : vector<8x32xf32>
    %210 = arith.negf %209 : vector<8x32xf32>
    %211 = math.exp %210 : vector<8x32xf32>
    %cst_46 = arith.constant 1.000000e+00 : f32
    %212 = vector.broadcast %cst_46 : f32 to vector<8x32xf32>
    %213 = arith.addf %212, %211 : vector<8x32xf32>
    %214 = arith.divf %212, %213 : vector<8x32xf32>
    %215 = arith.mulf %194, %167 : vector<8x32xf32>
    %216 = arith.mulf %182, %202 : vector<8x32xf32>
    %217 = arith.addf %215, %216 : vector<8x32xf32>
    %218 = math.tanh %217 : vector<8x32xf32>
    %219 = arith.mulf %214, %218 : vector<8x32xf32>
    %c0_47 = arith.constant 0 : index
    %c1 = arith.constant 1 : index
    %220 = vector.load %arg4[%c0_47, %c1] : memref<48x4xf32, #tpu.memory_space<vmem>>, vector<32x1xf32>
    %c0_48 = arith.constant 0 : index
    %c2 = arith.constant 2 : index
    %221 = vector.load %arg4[%c0_48, %c2] : memref<48x4xf32, #tpu.memory_space<vmem>>, vector<32x1xf32>
    %c1_49 = arith.constant 1 : index
    %c3_50 = arith.constant 3 : index
    %222 = vector.load %arg4[%c1_49, %c3_50] : memref<48x4xf32, #tpu.memory_space<vmem>>, vector<1x1xf32>
    %cst_51 = arith.constant dense<0.000000e+00> : vector<8x1xf32>
    %223 = tpu.matmul %219, %220, %cst_51 {dimension_numbers = #tpu.dot_dimension_numbers<[1], [0], [0], [1], [0, 0, 1, 1], [], []>} : vector<8x32xf32>, vector<32x1xf32>, vector<8x1xf32> -> vector<8x1xf32>
    %c0_52 = arith.constant 0 : index
    %c0_53 = arith.constant 0 : index
    %224 = vector.load %arg1[%c0_52, %c0_53] : memref<8x32xf32, #tpu.memory_space<vmem>>, vector<8x32xf32>
    %cst_54 = arith.constant dense<0.000000e+00> : vector<8x1xf32>
    %225 = tpu.matmul %224, %221, %cst_54 {dimension_numbers = #tpu.dot_dimension_numbers<[1], [0], [0], [1], [0, 0, 1, 1], [], []>} : vector<8x32xf32>, vector<32x1xf32>, vector<8x1xf32> -> vector<8x1xf32>
    %226 = arith.addf %223, %225 : vector<8x1xf32>
    %227 = vector.broadcast %222 : vector<1x1xf32> to vector<8x1xf32>
    %228 = arith.addf %226, %227 : vector<8x1xf32>
    %c0_55 = arith.constant 0 : index
    %c0_56 = arith.constant 0 : index
    %229 = vector.load %arg5[%c0_55, %c0_56] : memref<8x1xf32, #tpu.memory_space<vmem>>, vector<8x1xf32>
    tpu.vector_store %arg5[%c0_55, %c0_56], %228 {strides = array<i32>} : memref<8x1xf32, #tpu.memory_space<vmem>>, vector<8x1xf32>,
    return
  }
  func.func @transform_0(%arg0: i32) -> (i32, i32) {
    %c0_i32 = arith.constant 0 : i32
    %c0_i32_0 = arith.constant 0 : i32
    %c0_i32_1 = arith.constant 0 : i32
    return %c0_i32, %c0_i32_0 : i32, i32
  }
  func.func @transform_1(%arg0: i32) -> (i32, i32) {
    %c0_i32 = arith.constant 0 : i32
    %c0_i32_0 = arith.constant 0 : i32
    %c0_i32_1 = arith.constant 0 : i32
    return %c0_i32, %c0_i32_0 : i32, i32
  }
  func.func @transform_2(%arg0: i32) -> (i32, i32) {
    %c0_i32 = arith.constant 0 : i32
    %c0_i32_0 = arith.constant 0 : i32
    %c0_i32_1 = arith.constant 0 : i32
    return %c0_i32, %c0_i32_0 : i32, i32
  }
  func.func @transform_3(%arg0: i32) -> (i32, i32) {
    %c0_i32 = arith.constant 0 : i32
    %c0_i32_0 = arith.constant 0 : i32
    %c0_i32_1 = arith.constant 0 : i32
    return %c0_i32, %c0_i32_0 : i32, i32
  }
  func.func @transform_4(%arg0: i32) -> (i32, i32) {
    %c0_i32 = arith.constant 0 : i32
    %c0_i32_0 = arith.constant 0 : i32
    %c0_i32_1 = arith.constant 0 : i32
    return %c0_i32, %c0_i32_0 : i32, i32
  }
}

</mosaic_0001>

<bundles_post_ra>
// kernel: tpu_custom_call.1
= control target key start
LH: loop header
LB: loop body
LE: loop exit
PB: predicated region body
PF: predicated region fallthrough
CT: control target
= control target key end

     0   :  { %vm36_vm0 = vcmask 392192   ;;  %v2251_v3 = vmov 0.0|0.0   ;;  %vm2252_vm1 = vmmov 0   ;;  %v2253_v4 = vmov 0.0   ;;  %s2254_s7 = smov 125   ;;  %s2257_s9 = smov 127   ;;  %s2617_s3 = inlined_call_operand.vmem [shape: f32[48,4], index: 3, kind: input, shape index: {}]   ;;  %s2618_s1 = inlined_call_operand.vmem [shape: f32[32,48], index: 1, kind: input, shape index: {}]   ;;  %s2619_s2 = inlined_call_operand.vmem [shape: f32[136,32], index: 2, kind: input, shape index: {}]   ;;  %s2620_s0 = inlined_call_operand.vmem [shape: f32[8,32], index: 0, kind: input, shape index: {}]   ;;  %s2621_s4 = inlined_call_operand.vmem [shape: f32[8,1], index: 4, kind: output, shape index: {}]  }
   0x1   :  { %v2286_v0 = vld [vmem:[%s2617_s3] sm:$0xff]  ;;  %v2291_v1 = vld [vmem:[%s2617_s3 + $0x8] sm:$0xff]  ;;  %v2296_v2 = vld [vmem:[%s2617_s3 + $0x10] sm:$0xff]  ;;  %2050 = vmatprep.subr.bf16.mxu1 %v2251_v3  ;;  %1848 = vmatprep.mubr.msk.f32.mxu1 %vm2252_vm1, %v2253_v4  ;;  %v2255_v40 = vmov 0   ;;  %vm168_vm2 = vcmask 261120   ;;  %vm1676_vm3 = vcmask 7168  }
   0x2   :  { %v2038_v5 = vpack.c.bf16 %v2291_v1, %v2286_v0  ;;  %v2306_v6 = vld [vmem:[%s2617_s3 + $0x18] sm:$0xff]  ;;  %v21_v8 = vld [vmem:[%s2617_s3 + $0x20] sm:$0xff]  ;;  %v22_v9 = vld [vmem:[%s2617_s3 + $0x28] sm:$0xff]  ;;  %2166 = vset.pattern.permute.xlu1 %v2255_v40  ;;  %2165 = vset.pattern.permute.xlu0 %v2255_v40 }
   0x3   :  { %v2042_v7 = vpack.c.bf16 %v2306_v6, %v2296_v2  ;;  %v24_v10 = vld [vmem:[%s2618_s1] sm:$0xff]  ;;  %v135_v13 = vld [vmem:[%s2619_s2 + $0x8] sm:$0xff]  ;;  %v136_v14 = vld [vmem:[%s2619_s2 + $0x10] sm:$0xff]  ;;  %v2046_v16 = vpack.c.bf16 %v22_v9, %v21_v8 }
   0x4   :  { %2039 = vmatprep.subr.bf16.mxu0 %v2038_v5  ;;  %1834 = vmatprep.mubr.msk.f32.mxu0 %vm36_vm0, %v24_v10  ;;  %v1682_v11 = vld [vmem:[%s2617_s3] ss:$0 sm:$0xff]  ;;  %v137_v15 = vld [vmem:[%s2619_s2 + $0x18] sm:$0xff]  ;;  %v139_v20 = vld [vmem:[%s2619_s2 + $0x28] sm:$0xff] }
   0x5   :  { %v134_v12 = vld [vmem:[%s2619_s2] sm:$0xff]  ;;  %2041 = vmatpush3.bf16.msra.mxu0 %v2038_v5  ;;  %33 = vrot.lane.b32.xlu0 %v1682_v11, %s2254_s7  ;;  %v2339_v18 = vpack.c.bf16 %v137_v15, %v136_v14  ;;  %v143_v22 = vld [vmem:[%s2619_s2 + $0x48] sm:$0xff]  ;;  %v140_v25 = vld [vmem:[%s2619_s2 + $0x30] sm:$0xff] }
   0x6   :  { %2043 = vmatprep.subr.bf16.mxu0 %v2042_v7  ;;  %v2336_v17 = vpack.c.bf16 %v135_v13, %v134_v12  ;;  %v138_v19 = vld [vmem:[%s2619_s2 + $0x20] sm:$0xff]  ;;  %v25_v24 = vld [vmem:[%s2618_s1 + $0x8] sm:$0xff]  ;;  %v141_v26 = vld [vmem:[%s2619_s2 + $0x38] sm:$0xff] }
   0x7   :  { %v142_v21 = vld [vmem:[%s2619_s2 + $0x40] sm:$0xff]  ;;  %v2355_v23 = vpack.c.bf16 %v139_v20, %v138_v19  ;;  %v26_v27 = vld [vmem:[%s2618_s1 + $0x10] sm:$0xff]  ;;  %v145_v30 = vld [vmem:[%s2619_s2 + $0x58] sm:$0xff]  ;;  %v2382_v31 = vpack.c.bf16 %v141_v26, %v140_v25 }
   0x8   :  { %2052 = vmatpush3.bf16.msra.mxu1 %v2336_v17  ;;  %v2371_v28 = vpack.c.bf16 %v143_v22, %v142_v21  ;;  %v144_v29 = vld [vmem:[%s2619_s2 + $0x50] sm:$0xff]  ;;  %v27_v32 = vld [vmem:[%s2618_s1 + $0x18] sm:$0xff]  ;;  %v146_v33 = vld [vmem:[%s2619_s2 + $0x60] sm:$0xff] }
   0x9   :  { %2045 = vmatpush3.bf16.msra.mxu0 %v2042_v7  ;;  %2053 = vmatprep.subr.bf16.mxu1 %v2251_v3  ;;  %v147_v34 = vld [vmem:[%s2619_s2 + $0x68] sm:$0xff]  ;;  %v2398_v35 = vpack.c.bf16 %v145_v30, %v144_v29  ;;  %v148_v37 = vld [vmem:[%s2619_s2 + $0x70] sm:$0xff]  ;;  %v149_v38 = vld [vmem:[%s2619_s2 + $0x78] sm:$0xff] }
   0xa   :  { %2047 = vmatprep.subr.bf16.mxu0 %v2046_v16  ;;  %v2403_v36 = vpack.c.bf16 %v147_v34, %v146_v33  ;;  %v2418_v39 = vpack.c.bf16 %v149_v38, %v148_v37  ;;  %v2442_v58 = vld [vmem:[%s2619_s2 + $0x80] ss:$0 sm:$0xff]  ;;  %v2447_v59 = vld [vmem:[%s2619_s2 + $0x81] ss:$0 sm:$0xff]  ;;  %v2454_v63 = vld [vmem:[%s2619_s2 + $0x83] ss:$0 sm:$0xff] }
   0xb   :  { %v2459_v5 = vld [vmem:[%s2619_s2 + $0x84] ss:$0 sm:$0xff]  ;;  %v2464_v7 = vld [vmem:[%s2619_s2 + $0x85] ss:$0 sm:$0xff]  ;;  %v2472_v13 = vld [vmem:[%s2619_s2 + $0x82] ss:$0 sm:$0xff] }
   0xc   :  { %2055 = vmatpush3.bf16.msra.mxu1 %v2339_v18  ;;  %v2478_v20 = vld [vmem:[%s2619_s2 + $0x87] ss:$0 sm:$0xff] }
   0xd   :  { %2049 = vmatpush3.bf16.msra.mxu0 %v2046_v16  ;;  %2056 = vmatprep.subr.bf16.mxu1 %v2251_v3 }
   0xe   :  { %2062 = vmatprep.subr.bf16.mxu0 %v2251_v3 }
   0xf   :  { %1849 = vmatmul.mubr.f32.vlgmr.msra.gmra.mrb[0].mxu1 %v2253_v4 }
  0x10   :  { %1835 = vmatmul.mubr.msk.f32.vlgmr.msra.gmra.mrb[0].mxu0 %vm36_vm0, %v25_v24  ;;  %2058 = vmatpush3.bf16.msra.mxu1 %v2355_v23  ;;  %v2484_v24 = vld [vmem:[%s2619_s2 + $0x86] ss:$0 sm:$0xff]  ;;  %s2256_s2 = smov 126  }
  0x11   :  { %1837 = vmatprep.mubr.msk.f32.mxu0 %vm36_vm0, %v26_v27  ;;  %2059 = vmatprep.subr.bf16.mxu1 %v2251_v3 }
  0x12   :  { %1859 = vmatprep.mubr.msk.f32.mxu1 %vm2252_vm1, %v2253_v4  ;;  %2064 = vmatpush3.bf16.msra.mxu0 %v2371_v28 }
  0x13   :  { %2065 = vmatprep.subr.bf16.mxu0 %v2251_v3 }
  0x14   :  { %1838 = vmatmul.mubr.msk.f32.gmra.mrb[2].mxu0 %vm36_vm0, %v27_v32  ;;  %2061 = vmatpush3.bf16.msra.mxu1 %v2382_v31 }
  0x15   :  { %2068 = vmatprep.subr.bf16.mxu1 %v2251_v3  ;;  %1870 = vmatprep.mubr.msk.f32.mxu0 %vm2252_vm1, %v2253_v4 }
  0x16   :  { %2067 = vmatpush3.bf16.msra.mxu0 %v2398_v35 }
  0x17   :  { %1860 = vmatmul.mubr.f32.vlgmr.msra.gmra.mrb[2].mxu1 %v2253_v4  ;;  %2074 = vmatprep.subr.bf16.mxu0 %v2251_v3 }
  0x18   :  { %2070 = vmatpush3.bf16.msra.mxu1 %v2403_v36  ;;  %1881 = vmatprep.mubr.msk.f32.mxu1 %vm2252_vm1, %v2253_v4 }
  0x19   :  { %2071 = vmatprep.subr.bf16.mxu1 %v2251_v3  ;;  %1871 = vmatmul.mubr.f32.vlgmr.msra.gmra.mrb[4].mxu0 %v2253_v4 }
  0x1a   :  { %2076 = vmatpush3.bf16.msra.mxu0 %v2336_v17  ;;  %1892 = vmatprep.mubr.msk.f32.mxu0 %vm2252_vm1, %v2253_v4 }
  0x1b   :  { %2077 = vmatprep.subr.bf16.mxu0 %v2251_v3 }
  0x1c   :  { %2073 = vmatpush3.bf16.msra.mxu1 %v2418_v39 }
  0x1d   :  { %2080 = vmatprep.subr.bf16.mxu1 %v2251_v3 }
  0x1e   :  { %2079 = vmatpush3.bf16.msra.mxu0 %v2339_v18 }
  0x1f   :  { %1882 = vmatmul.mubr.f32.vlgmr.msra.gmra.mrb[4].mxu1 %v2253_v4  ;;  %2086 = vmatprep.subr.bf16.mxu0 %v2251_v3 }
  0x20   :  { %2082 = vmatpush3.bf16.msra.mxu1 %v2355_v23  ;;  %1903 = vmatprep.mubr.msk.f32.mxu1 %vm2252_vm1, %v2253_v4 }
  0x21   :  { %2083 = vmatprep.subr.bf16.mxu1 %v2251_v3 }
  0x24   :  { %2085 = vmatpush3.bf16.msra.mxu1 %v2382_v31 }
  0x25   :  { %2092 = vmatprep.subr.bf16.mxu1 %v2251_v3 }
  0x77   :  { %v34_v41 = vpop.permute.xlu0 %33 }
  0xe2   :  { %v238_v42 = vpop.f32.mrb[0].mxu1 }
  0xe3   :  { %v1836_v43 = vpop.f32.mrb[0].mxu0  ;;  %v1850_v44 = vpop.f32.mrb[1].mxu1 }
  0xe4   :  { %v121_v45 = vadd.f32 %v1836_v43, %v34_v41  ;;  %v115_v46 = vpop.f32.mrb[1].mxu0 }
  0xe5   :  { %v116_v47 = vadd.f32 %v115_v46, %v34_v41 }
  0xe6   :  { %517 = vperm.xlu1 %2166, %v121_v45  }
  0xe7   :  { %v1839_v48 = vpop.f32.mrb[2].mxu0  ;;  %160 = vperm.xlu0 %2165, %v116_v47  }
  0xe8   :  { %v125_v49 = vpop.f32.mrb[3].mxu0  ;;  %v131_v54 = vadd.f32 %v1839_v48, %v34_v41 }
  0xe9   :  { %v126_v50 = vadd.f32 %v125_v49, %v34_v41 }
  0xea   :  { %v325_v51 = vpop.f32.mrb[2].mxu1 }
  0xeb   :  { %841 = vperm.xlu1 %2166, %v126_v50   ;;  %v1861_v52 = vpop.f32.mrb[3].mxu1 }
  0xec   :  { %v412_v53 = vpop.f32.mrb[4].mxu0 }
  0xed   :  { %v1872_v55 = vpop.f32.mrb[5].mxu0 }
  0xef   :  { %1165 = vperm.xlu1 %2166, %v131_v54  }
  0xf2   :  { %v494_v56 = vpop.f32.mrb[4].mxu1 }
  0xf3   :  { %v1883_v57 = vpop.f32.mrb[5].mxu1 }
 0x165   :  { %v518_v47 = vpop.permute.xlu1 %517 }
 0x166   :  { %v161_v60 = vpop.permute.xlu0 %160  ;;  %v520_v48 = vmul.f32 %v2442_v58, %v518_v47  ;;  %v602_v49 = vmul.f32 %v2447_v59, %v518_v47 }
 0x167   :  { %v167_v61 = vmul.f32 %v2442_v58, %v161_v60  ;;  %v258_v62 = vmul.f32 %v2447_v59, %v161_v60  ;;  %v427_v10 = vmul.f32 %v2454_v63, %v161_v60  ;;  %v345_v19 = vmul.f32 %v2472_v13, %v161_v60 }
 0x169   :  { %v242_v8 = vadd.f32 %v238_v42, %v167_v61  ;;  %v329_v9 = vadd.f32 %v325_v51, %v258_v62  ;;  %v498_v16 = vadd.f32 %v494_v56, %v427_v10  ;;  %v416_v22 = vadd.f32 %v412_v53, %v345_v19 }
 0x16a   :  { %v681_v62 = vmul.f32 %v2472_v13, %v518_v47 }
 0x16b   :  { %v247_v11 = vadd.f32 %v2459_v5, %v242_v8  ;;  %v334_v12 = vadd.f32 %v2464_v7, %v329_v9  ;;  %v503_v21 = vadd.f32 %v2478_v20, %v498_v16  ;;  %v421_v26 = vadd.f32 %v2484_v24, %v416_v22 }
 0x16c   :  { %v755_v8 = vmul.f32 %v2454_v63, %v518_v47 }
 0x16d   :  { %v1689_v14 = vmul.f32 -1.442695, %v247_v11  ;;  %v1692_v15 = vmul.f32 -1.442695, %v334_v12  ;;  %v1697_v25 = vmul.f32 -1.442695, %v503_v21 }
 0x16f   :  { %2187 = vpow2.f32 %v1689_v14 }
 0x170   :  { %2189 = vpow2.f32 %v1692_v15 }
 0x171   :  { %2191 = vpow2.f32 %v1697_v25 }
 0x172   :  { %2193 = vtanh.f32 %v421_v26 }
 0x179   :  { %v2188_v27 = vpop.eup %2187 }
 0x17a   :  { %v2190_v29 = vpop.eup %2189  ;;  %v251_v30 = vadd.f32 1.0, %v2188_v27 }
 0x17b   :  { %v338_v32 = vadd.f32 1.0, %v2190_v29  ;;  %v2192_v33 = vpop.eup %2191 }
 0x17c   :  { %2195 = vrcp.f32 %v251_v30  ;;  %v2194_v34 = vpop.eup %2193  ;;  %v507_v41 = vadd.f32 1.0, %v2192_v33 }
 0x17d   :  { %2197 = vrcp.f32 %v338_v32 }
 0x17e   :  { %2199 = vrcp.f32 %v507_v41 }
 0x186   :  { %v2196_v37 = vpop.eup %2195 }
 0x187   :  { %v2198_v38 = vpop.eup %2197  ;;  %v511_v40 = vmul.f32 %v2196_v37, %v2194_v34 }
 0x188   :  { %v510_v42 = vmul.f32 0.0, %v2198_v38  ;;  %v2200_v44 = vpop.eup %2199 }
 0x18a   :  { %v2487_v43 = vadd.f32 %v511_v40, %v510_v42 }
 0x18c   :  { %2201 = vtanh.f32 %v2487_v43 }
 0x196   :  { %v2202_v45 = vpop.eup %2201 }
 0x197   :  { %v514_v46 = vmul.f32 %v2202_v45, %v2200_v44 }
 0x199   :  { %1893 = vmatmul.mubr.msk.f32.vlgmr.msra.gmra.mrb[6].mxu0 %vm168_vm2, %v514_v46  ;;  %1904 = vmatmul.mubr.msk.f32.vlgmr.msra.gmra.mrb[6].mxu1 %vm168_vm2, %v514_v46 }
 0x19a   :  { %2088 = vmatpush3.bf16.msra.mxu0 %v2371_v28  ;;  %2094 = vmatpush3.bf16.msra.mxu1 %v2403_v36 }
 0x19b   :  { %2089 = vmatprep.subr.bf16.mxu0 %v2251_v3  ;;  %2095 = vmatprep.subr.bf16.mxu1 %v2251_v3 }
 0x19c   :  { %1914 = vmatprep.mubr.msk.f32.mxu0 %vm2252_vm1, %v2253_v4  ;;  %1925 = vmatprep.mubr.msk.f32.mxu1 %vm2252_vm1, %v2253_v4 }
 0x19e   :  { %2091 = vmatpush3.bf16.msra.mxu0 %v2398_v35  ;;  %2097 = vmatpush3.bf16.msra.mxu1 %v2418_v39 }
 0x19f   :  { %2098 = vmatprep.subr.bf16.mxu0 %v2251_v3  ;;  %2104 = vmatprep.subr.bf16.mxu1 %v2251_v3 }
 0x1a1   :  { %1915 = vmatmul.mubr.msk.f32.vlgmr.msra.gmra.mrb[8].mxu0 %vm168_vm2, %v514_v46  ;;  %1926 = vmatmul.mubr.msk.f32.vlgmr.msra.gmra.mrb[8].mxu1 %vm168_vm2, %v514_v46 }
 0x1a2   :  { %2100 = vmatpush3.bf16.msra.mxu0 %v2336_v17  ;;  %2106 = vmatpush3.bf16.msra.mxu1 %v2355_v23 }
 0x1a3   :  { %2101 = vmatprep.subr.bf16.mxu0 %v2251_v3  ;;  %2107 = vmatprep.subr.bf16.mxu1 %v2251_v3 }
 0x1a4   :  { %1936 = vmatprep.mubr.msk.f32.mxu0 %vm2252_vm1, %v2253_v4  ;;  %1947 = vmatprep.mubr.msk.f32.mxu1 %vm2252_vm1, %v2253_v4 }
 0x1a6   :  { %2103 = vmatpush3.bf16.msra.mxu0 %v2339_v18  ;;  %2109 = vmatpush3.bf16.msra.mxu1 %v2382_v31 }
 0x1a7   :  { %2110 = vmatprep.subr.bf16.mxu0 %v2251_v3  ;;  %2116 = vmatprep.subr.bf16.mxu1 %v2251_v3 }
 0x26c   :  { %v590_v50 = vpop.f32.mrb[6].mxu0  ;;  %v669_v51 = vpop.f32.mrb[6].mxu1 }
 0x26d   :  { %v594_v52 = vadd.f32 %v590_v50, %v520_v48  ;;  %v673_v53 = vadd.f32 %v669_v51, %v602_v49  ;;  %v1894_v54 = vpop.f32.mrb[7].mxu0  ;;  %v1905_v55 = vpop.f32.mrb[7].mxu1 }
 0x26f   :  { %v595_v56 = vadd.f32 %v2459_v5, %v594_v52  ;;  %v674_v57 = vadd.f32 %v2464_v7, %v673_v53 }
 0x271   :  { %v1699_v60 = vmul.f32 -1.442695, %v595_v56  ;;  %v1701_v61 = vmul.f32 -1.442695, %v674_v57 }
 0x273   :  { %2203 = vpow2.f32 %v1699_v60 }
 0x274   :  { %2205 = vpow2.f32 %v1701_v61  ;;  %v748_v9 = vpop.f32.mrb[8].mxu0  ;;  %v822_v10 = vpop.f32.mrb[8].mxu1 }
 0x275   :  { %v752_v11 = vadd.f32 %v748_v9, %v681_v62  ;;  %v826_v12 = vadd.f32 %v822_v10, %v755_v8  ;;  %v1916_v14 = vpop.f32.mrb[9].mxu0  ;;  %v1927_v15 = vpop.f32.mrb[9].mxu1 }
 0x277   :  { %v827_v16 = vadd.f32 %v2478_v20, %v826_v12  ;;  %v753_v21 = vadd.f32 %v2484_v24, %v752_v11 }
 0x279   :  { %v1704_v19 = vmul.f32 -1.442695, %v827_v16 }
 0x27b   :  { %2207 = vpow2.f32 %v1704_v19 }
 0x27c   :  { %2209 = vtanh.f32 %v753_v21 }
 0x27d   :  { %v2204_v22 = vpop.eup %2203 }
 0x27e   :  { %v2206_v25 = vpop.eup %2205  ;;  %v599_v26 = vadd.f32 1.0, %v2204_v22 }
 0x27f   :  { %v678_v27 = vadd.f32 1.0, %v2206_v25 }
 0x280   :  { %2211 = vrcp.f32 %v599_v26 }
 0x281   :  { %2213 = vrcp.f32 %v678_v27 }
 0x285   :  { %v2208_v29 = vpop.eup %2207 }
 0x286   :  { %v2210_v30 = vpop.eup %2209  ;;  %v831_v37 = vadd.f32 1.0, %v2208_v29 }
 0x288   :  { %2215 = vrcp.f32 %v831_v37 }
 0x28a   :  { %v2212_v32 = vpop.eup %2211 }
 0x28b   :  { %v2214_v33 = vpop.eup %2213  ;;  %v835_v34 = vmul.f32 %v2212_v32, %v2210_v30 }
 0x28c   :  { %v834_v38 = vmul.f32 %v2214_v33, %v2487_v43  ;;  %v842_v43 = vpop.permute.xlu1 %841 }
 0x28e   :  { %v2527_v40 = vadd.f32 %v835_v34, %v834_v38 }
 0x290   :  { %2217 = vtanh.f32 %v2527_v40 }
 0x292   :  { %v2216_v41 = vpop.eup %2215 }
 0x29a   :  { %v2218_v42 = vpop.eup %2217 }
 0x29b   :  { %v838_v44 = vmul.f32 %v2218_v42, %v2216_v41 }
 0x29d   :  { %1937 = vmatmul.mubr.msk.f32.vlgmr.msra.gmra.mrb[10].mxu0 %vm168_vm2, %v838_v44  ;;  %1948 = vmatmul.mubr.msk.f32.vlgmr.msra.gmra.mrb[10].mxu1 %vm168_vm2, %v838_v44 }
 0x29e   :  { %2112 = vmatpush3.bf16.msra.mxu0 %v2371_v28  ;;  %2118 = vmatpush3.bf16.msra.mxu1 %v2403_v36 }
 0x29f   :  { %2113 = vmatprep.subr.bf16.mxu0 %v2251_v3  ;;  %2119 = vmatprep.subr.bf16.mxu1 %v2251_v3 }
 0x2a0   :  { %1958 = vmatprep.mubr.msk.f32.mxu0 %vm2252_vm1, %v2253_v4  ;;  %1969 = vmatprep.mubr.msk.f32.mxu1 %vm2252_vm1, %v2253_v4 }
 0x2a2   :  { %2115 = vmatpush3.bf16.msra.mxu0 %v2398_v35  ;;  %2121 = vmatpush3.bf16.msra.mxu1 %v2418_v39 }
 0x2a3   :  { %2122 = vmatprep.subr.bf16.mxu0 %v2251_v3  ;;  %2128 = vmatprep.subr.bf16.mxu1 %v2251_v3 }
 0x2a5   :  { %1959 = vmatmul.mubr.msk.f32.vlgmr.msra.gmra.mrb[12].mxu0 %vm168_vm2, %v838_v44  ;;  %1970 = vmatmul.mubr.msk.f32.vlgmr.msra.gmra.mrb[12].mxu1 %vm168_vm2, %v838_v44 }
 0x2a6   :  { %2124 = vmatpush3.bf16.msra.mxu0 %v2336_v17  ;;  %2130 = vmatpush3.bf16.msra.mxu1 %v2355_v23  ;;  %v2167_v17 = vpack.i.bf16 %v2291_v1, %v2286_v0  ;;  %v2177_v23 = vpack.i.bf16 %v2306_v6, %v2296_v2  ;;  %v1005_v2 = vmul.f32 %v2472_v13, %v842_v43 }
 0x2a7   :  { %2125 = vmatprep.subr.bf16.mxu0 %v2251_v3  ;;  %2131 = vmatprep.subr.bf16.mxu1 %v2251_v3  ;;  %v1079_v6 = vmul.f32 %v2454_v63, %v842_v43 }
 0x2a8   :  { %1980 = vmatprep.mubr.msk.f32.mxu0 %vm2252_vm1, %v2253_v4  ;;  %1991 = vmatprep.mubr.msk.f32.mxu1 %vm2252_vm1, %v2253_v4 }
 0x2a9   :  { %2168 = vrot.lane.b32.xlu0 %v2167_v17, %s2256_s2  ;;  %2173 = vrot.lane.b32.xlu1 %v2167_v17, %s2257_s9 }
 0x2aa   :  { %2127 = vmatpush3.bf16.msra.mxu0 %v2339_v18  ;;  %2133 = vmatpush3.bf16.msra.mxu1 %v2382_v31  ;;  %v844_v18 = vmul.f32 %v2442_v58, %v842_v43  ;;  %v926_v31 = vmul.f32 %v2447_v59, %v842_v43 }
 0x2ab   :  { %2134 = vmatprep.subr.bf16.mxu0 %v2251_v3  ;;  %2140 = vmatprep.subr.bf16.mxu1 %v2251_v3 }
 0x2ad   :  { %2178 = vrot.lane.b32.xlu0 %v2177_v23, %s2256_s2  ;;  %2183 = vrot.lane.b32.xlu1 %v2177_v23, %s2257_s9 }
 0x370   :  { %v914_v45 = vpop.f32.mrb[10].mxu0  ;;  %v993_v46 = vpop.f32.mrb[10].mxu1 }
 0x371   :  { %v918_v47 = vadd.f32 %v914_v45, %v844_v18  ;;  %v997_v48 = vadd.f32 %v993_v46, %v926_v31  ;;  %v1938_v49 = vpop.f32.mrb[11].mxu0  ;;  %v1949_v0 = vpop.f32.mrb[11].mxu1  ;;  %v1492_v18 = vld [vmem:[%s2620_s0] sm:$0xff] }
 0x372   :  { %v1721_v31 = vld [vmem:[%s2617_s3 + $0x1] ss:$0 sm:$0xff] }
 0x373   :  { %v919_v1 = vadd.f32 %v2459_v5, %v918_v47  ;;  %v998_v50 = vadd.f32 %v2464_v7, %v997_v48  ;;  %1672 = vrot.lane.b32.xlu0 %v1721_v31, %s2254_s7 }
 0x375   :  { %v1706_v51 = vmul.f32 -1.442695, %v919_v1  ;;  %v1708_v52 = vmul.f32 -1.442695, %v998_v50 }
 0x377   :  { %2219 = vpow2.f32 %v1706_v51 }
 0x378   :  { %2221 = vpow2.f32 %v1708_v52  ;;  %v1072_v53 = vpop.f32.mrb[12].mxu0  ;;  %v1146_v54 = vpop.f32.mrb[12].mxu1 }
 0x379   :  { %v1076_v55 = vadd.f32 %v1072_v53, %v1005_v2  ;;  %v1150_v56 = vadd.f32 %v1146_v54, %v1079_v6  ;;  %v1960_v57 = vpop.f32.mrb[13].mxu0  ;;  %v1971_v60 = vpop.f32.mrb[13].mxu1 }
 0x37b   :  { %v1151_v61 = vadd.f32 %v2478_v20, %v1150_v56  ;;  %v1077_v8 = vadd.f32 %v2484_v24, %v1076_v55 }
 0x37d   :  { %v1711_v62 = vmul.f32 -1.442695, %v1151_v61 }
 0x37f   :  { %2223 = vpow2.f32 %v1711_v62 }
 0x380   :  { %2225 = vtanh.f32 %v1077_v8 }
 0x381   :  { %v2220_v9 = vpop.eup %2219 }
 0x382   :  { %v2222_v10 = vpop.eup %2221  ;;  %v923_v11 = vadd.f32 1.0, %v2220_v9 }
 0x383   :  { %v1002_v12 = vadd.f32 1.0, %v2222_v10 }
 0x384   :  { %2227 = vrcp.f32 %v923_v11 }
 0x385   :  { %2229 = vrcp.f32 %v1002_v12 }
 0x389   :  { %v2224_v14 = vpop.eup %2223 }
 0x38a   :  { %v2226_v15 = vpop.eup %2225  ;;  %v1155_v22 = vadd.f32 1.0, %v2224_v14 }
 0x38c   :  { %2231 = vrcp.f32 %v1155_v22 }
 0x38e   :  { %v2228_v16 = vpop.eup %2227 }
 0x38f   :  { %v2230_v19 = vpop.eup %2229  ;;  %v1159_v21 = vmul.f32 %v2228_v16, %v2226_v15 }
 0x390   :  { %v1158_v25 = vmul.f32 %v2230_v19, %v2527_v40 }
 0x392   :  { %v2571_v26 = vadd.f32 %v1159_v21, %v1158_v25 }
 0x394   :  { %2233 = vtanh.f32 %v2571_v26 }
 0x396   :  { %v2232_v27 = vpop.eup %2231 }
 0x39e   :  { %v2234_v29 = vpop.eup %2233 }
 0x39f   :  { %v1162_v30 = vmul.f32 %v2234_v29, %v2232_v27 }
 0x3a1   :  { %1981 = vmatmul.mubr.msk.f32.vlgmr.msra.gmra.mrb[14].mxu0 %vm168_vm2, %v1162_v30  ;;  %1992 = vmatmul.mubr.msk.f32.vlgmr.msra.gmra.mrb[14].mxu1 %vm168_vm2, %v1162_v30 }
 0x3a2   :  { %2136 = vmatpush3.bf16.msra.mxu0 %v2371_v28  ;;  %2142 = vmatpush3.bf16.msra.mxu1 %v2403_v36  ;;  %v1166_v28 = vpop.permute.xlu1 %1165  ;;  %v2169_v36 = vpop.permute.xlu0 %2168 }
 0x3a3   :  { %2137 = vmatprep.subr.bf16.mxu0 %v2251_v3  ;;  %2143 = vmatprep.subr.bf16.mxu1 %v2251_v3  ;;  %v2170_v33 = vunpack.i.l.bf16 %v2169_v36  ;;  %v1168_v45 = vmul.f32 %v2442_v58, %v1166_v28  ;;  %v1329_v6 = vmul.f32 %v2472_v13, %v1166_v28  ;;  %v1403_v53 = vmul.f32 %v2454_v63, %v1166_v28 }
 0x3a4   :  { %2002 = vmatprep.mubr.msk.f32.mxu0 %vm2252_vm1, %v2253_v4  ;;  %2013 = vmatprep.mubr.msk.f32.mxu1 %vm2252_vm1, %v2253_v4 }
 0x3a6   :  { %2139 = vmatpush3.bf16.msra.mxu0 %v2398_v35  ;;  %2145 = vmatpush3.bf16.msra.mxu1 %v2418_v39  ;;  %v2174_v32 = vpop.permute.xlu1 %2173  ;;  %v2171_v35 = vunpack.i.h.bf16 %v2169_v36  ;;  %v2179_v40 = vpop.permute.xlu0 %2178 }
 0x3a7   :  { %2146 = vmatprep.subr.bf16.mxu0 %v2251_v3  ;;  %2152 = vmatprep.subr.bf16.mxu1 %v2251_v3  ;;  %v2176_v39 = vunpack.i.h.bf16 %v2174_v32  ;;  %v2175_v34 = vunpack.i.l.bf16 %v2174_v32  ;;  %v2181_v42 = vunpack.i.h.bf16 %v2179_v40  ;;  %v2180_v44 = vunpack.i.l.bf16 %v2179_v40 }
 0x3a8   :  { %v2147_v37 = vpack.c.bf16 %v2171_v35, %v2170_v33 }
 0x3a9   :  { %2003 = vmatmul.mubr.msk.f32.vlgmr.msra.gmra.mrb[16].mxu0 %vm168_vm2, %v1162_v30  ;;  %2014 = vmatmul.mubr.msk.f32.vlgmr.msra.gmra.mrb[16].mxu1 %vm168_vm2, %v1162_v30  ;;  %v2153_v38 = vpack.c.bf16 %v2176_v39, %v2175_v34 }
 0x3aa   :  { %2024 = vmatprep.mubr.msk.f32.mxu0 %vm2252_vm1, %v2253_v4  ;;  %2035 = vmatprep.mubr.msk.f32.mxu1 %vm2252_vm1, %v2253_v4  ;;  %v2184_v41 = vpop.permute.xlu1 %2183  ;;  %v2150_v4 = vpack.c.bf16 %v2181_v42, %v2180_v44 }
 0x3ab   :  { %v2186_v17 = vunpack.i.h.bf16 %v2184_v41  ;;  %v2185_v23 = vunpack.i.l.bf16 %v2184_v41  ;;  %2148 = vmatpush3.bf16.msra.mxu0 %v2147_v37  ;;  %2154 = vmatpush3.bf16.msra.mxu1 %v2153_v38 }
 0x3ac   :  { %2149 = vmatprep.subr.bf16.mxu0 %v2251_v3  ;;  %2155 = vmatprep.subr.bf16.mxu1 %v2251_v3  ;;  %v1250_v3 = vmul.f32 %v2447_v59, %v1166_v28 }
 0x3ad   :  { %v2156_v43 = vpack.c.bf16 %v2186_v17, %v2185_v23 }
 0x3af   :  { %2151 = vmatpush3.bf16.msra.mxu0 %v2150_v4  ;;  %2157 = vmatpush3.bf16.msra.mxu1 %v2156_v43 }
 0x3b2   :  { %2025 = vmatmul.mubr.msk.f32.vlgmr.msra.gmra.mrb[18].mxu0 %vm168_vm2, %v1492_v18 }
 0x3e5   :  { %v1673_v27 = vpop.permute.xlu0 %1672 }
 0x474   :  { %v1238_v46 = vpop.f32.mrb[14].mxu0  ;;  %v1317_v47 = vpop.f32.mrb[14].mxu1 }
 0x475   :  { %v1242_v48 = vadd.f32 %v1238_v46, %v1168_v45  ;;  %v1321_v49 = vadd.f32 %v1317_v47, %v1250_v3  ;;  %v1982_v0 = vpop.f32.mrb[15].mxu0  ;;  %v1993_v1 = vpop.f32.mrb[15].mxu1 }
 0x477   :  { %v1243_v50 = vadd.f32 %v2459_v5, %v1242_v48  ;;  %v1322_v51 = vadd.f32 %v2464_v7, %v1321_v49 }
 0x479   :  { %v1713_v52 = vmul.f32 -1.442695, %v1243_v50  ;;  %v1715_v2 = vmul.f32 -1.442695, %v1322_v51 }
 0x47b   :  { %2235 = vpow2.f32 %v1713_v52 }
 0x47c   :  { %2237 = vpow2.f32 %v1715_v2  ;;  %v1396_v58 = vpop.f32.mrb[16].mxu0  ;;  %v1470_v59 = vpop.f32.mrb[16].mxu1 }
 0x47d   :  { %v1400_v54 = vadd.f32 %v1396_v58, %v1329_v6  ;;  %v1474_v55 = vadd.f32 %v1470_v59, %v1403_v53  ;;  %v2004_v56 = vpop.f32.mrb[17].mxu0  ;;  %v2015_v57 = vpop.f32.mrb[17].mxu1 }
 0x47f   :  { %v1475_v60 = vadd.f32 %v2478_v20, %v1474_v55  ;;  %v1401_v5 = vadd.f32 %v2484_v24, %v1400_v54 }
 0x481   :  { %v1718_v61 = vmul.f32 -1.442695, %v1475_v60 }
 0x483   :  { %2239 = vpow2.f32 %v1718_v61 }
 0x484   :  { %2241 = vtanh.f32 %v1401_v5 }
 0x485   :  { %v2236_v7 = vpop.eup %2235  ;;  %v1578_v21 = vpop.f32.mrb[18].mxu0 }
 0x486   :  { %v2238_v62 = vpop.eup %2237  ;;  %v1247_v8 = vadd.f32 1.0, %v2236_v7  ;;  %v2026_v22 = vpop.f32.mrb[19].mxu0 }
 0x487   :  { %v1326_v9 = vadd.f32 1.0, %v2238_v62 }
 0x488   :  { %2243 = vrcp.f32 %v1247_v8 }
 0x489   :  { %2245 = vrcp.f32 %v1326_v9 }
 0x48d   :  { %v2240_v63 = vpop.eup %2239 }
 0x48e   :  { %v2242_v13 = vpop.eup %2241  ;;  %v1479_v14 = vadd.f32 1.0, %v2240_v63 }
 0x490   :  { %2247 = vrcp.f32 %v1479_v14 }
 0x492   :  { %v2244_v10 = vpop.eup %2243 }
 0x493   :  { %v2246_v11 = vpop.eup %2245  ;;  %v1483_v12 = vmul.f32 %v2244_v10, %v2242_v13 }
 0x494   :  { %v1482_v15 = vmul.f32 %v2246_v11, %v2571_v26 }
 0x496   :  { %v1484_v20 = vadd.f32 %v1483_v12, %v1482_v15 }
 0x498   :  { %2249 = vtanh.f32 %v1484_v20 }
 0x49a   :  { %v2248_v24 = vpop.eup %2247 }
 0x4a2   :  { %v2250_v16 = vpop.eup %2249 }
 0x4a3   :  { %v1486_v19 = vmul.f32 %v2250_v16, %v2248_v24 }
 0x4a5   :  { %2036 = vmatmul.mubr.msk.f32.vlgmr.msra.gmra.mrb[18].mxu1 %vm168_vm2, %v1486_v19 }
 0x578   :  { %v1663_v25 = vpop.f32.mrb[18].mxu1 }
 0x579   :  { %v1664_v29 = vadd.f32 %v1663_v25, %v1578_v21  ;;  %v2037_v30 = vpop.f32.mrb[19].mxu1 }
 0x57b   :  { %v1675_v28 = vadd.f32 %v1673_v27, %v1664_v29 }
 0x57d   :  { %1677 = vst.msk [vmem:[%s2621_s4] sm:$0xff] %vm1676_vm3, %v1675_v28 }

</bundles_post_ra>
